<compile_context>
chip_gen: v7x
topology: tpu7x:2x2x1
jax: 0.10.0
libtpu: 0.0.40
codegen_flags: <defaults>
</compile_context>

<pallas_src>
import functools

import jax
import jax.numpy as jnp
from jax.experimental import pallas as pl
from jax.experimental.pallas import tpu as pltpu


def _round_up(x, m):
    return (x + m - 1) // m * m


def _vmem_capacity_bytes():
    try:
        return int(pltpu.get_tpu_info().vmem_capacity_bytes)
    except Exception:
        return 64 * 1024 * 1024  # conservative fallback (v7x per-TC physical)


# ----------------------------------------------------------------------------
# Kernels (one row tile per grid step; weights resident in VMEM)
# ----------------------------------------------------------------------------

def _block_kernel_shortcut(x_ref, w0_ref, b0_ref, w1_ref, b1_ref, ws_ref,
                           o_ref, *, compute_dtype):
    """Row tile with a linear (no-bias) shortcut: two separate MXU dots."""
    x = x_ref[...].astype(jnp.float32)
    h0 = jnp.maximum(x, 0.0).astype(compute_dtype)         # relu in f32 -> MXU dtype
    net = (jnp.dot(h0, w0_ref[...], preferred_element_type=jnp.float32)
           + b0_ref[...])
    h1 = jnp.maximum(net, 0.0).astype(compute_dtype)
    dx = (jnp.dot(h1, w1_ref[...], preferred_element_type=jnp.float32)
          + b1_ref[...])
    x_s = jnp.dot(x.astype(compute_dtype), ws_ref[...],
                  preferred_element_type=jnp.float32)
    o_ref[...] = (x_s + dx).astype(o_ref.dtype)


def _block_kernel_identity(x_ref, w0_ref, b0_ref, w1_ref, b1_ref, o_ref,
                           *, compute_dtype):
    """Row tile with identity shortcut (size_in == size_out), residual in f32."""
    x = x_ref[...].astype(jnp.float32)
    h0 = jnp.maximum(x, 0.0).astype(compute_dtype)
    net = (jnp.dot(h0, w0_ref[...], preferred_element_type=jnp.float32)
           + b0_ref[...])
    h1 = jnp.maximum(net, 0.0).astype(compute_dtype)
    dx = (jnp.dot(h1, w1_ref[...], preferred_element_type=jnp.float32)
          + b1_ref[...])
    o_ref[...] = (x + dx).astype(o_ref.dtype)


# ----------------------------------------------------------------------------
# One-time parameter preparation (hoisted out of the per-call forward)
# ----------------------------------------------------------------------------

def prepare_params(params, compute_dtype=jnp.bfloat16):
    """Pad feature dims to multiples of 128 and cast weights once.

    params: 'w0' (size_in, size_h), 'b0' (size_h,), 'w1' (size_h, size_out),
            'b1' (size_out,), optional 'ws' (size_in, size_out).
            Weights are stored (in_features, out_features), i.e. transposed
            vs torch.  Zero padding is exact: relu(0)=0 and zero weight
            rows/cols contribute nothing.
    """
    size_in, size_h = params["w0"].shape
    size_out = params["w1"].shape[1]
    d_in = _round_up(size_in, 128)
    d_h = _round_up(size_h, 128)
    d_out = _round_up(size_out, 128)

    prepared = {
        "w0": jnp.pad(params["w0"],
                      ((0, d_in - size_in), (0, d_h - size_h))).astype(compute_dtype),
        "b0": jnp.pad(params["b0"], (0, d_h - size_h)
                      ).reshape(1, d_h).astype(jnp.float32),
        "w1": jnp.pad(params["w1"],
                      ((0, d_h - size_h), (0, d_out - size_out))).astype(compute_dtype),
        "b1": jnp.pad(params["b1"], (0, d_out - size_out)
                      ).reshape(1, d_out).astype(jnp.float32),
    }
    if "ws" in params:
        prepared["ws"] = jnp.pad(
            params["ws"],
            ((0, d_in - size_in), (0, d_out - size_out))).astype(compute_dtype)
    return jax.tree_util.tree_map(jnp.asarray, prepared)


# ----------------------------------------------------------------------------
# Forward
# ----------------------------------------------------------------------------

@functools.partial(jax.jit, static_argnames=("size_out", "tm"))
def resnet_block_fc(x, prepared, *, size_out, tm=512):
    """Pallas forward pass of ResnetBlockFC.

    x:        (N, size_in) float32
    prepared: output of prepare_params (padded / cast weights, reused per call)
    size_out: logical output feature count (static)
    tm:       row tile upper bound (512 works across v5e/v6e/v7x)
    """
    n, size_in = x.shape
    d_in, d_h = prepared["w0"].shape
    d_out = prepared["w1"].shape[1]
    compute_dtype = prepared["w0"].dtype
    has_shortcut = "ws" in prepared
    if not has_shortcut and size_in != size_out:
        raise ValueError("identity shortcut requires size_in == size_out "
                         "(pass 'ws' for a linear shortcut)")

    f32 = 4
    cb = jnp.dtype(compute_dtype).itemsize

    # Explicit zero pad only on the K (feature) dim when size_in % 128 != 0;
    # rows are never padded (Pallas masks the partial last row block).
    xp = x if d_in == size_in else jnp.pad(x, ((0, 0), (0, d_in - size_in)))

    # Row tile: 8-aligned, and keep the grid >= 2 steps so the parallel row
    # axis can be sharded across v7x's two TensorCores.
    n8 = _round_up(n, 8)
    half = _round_up(-(-n8 // 2), 8)
    tm_eff = max(8, min(tm, half if n8 > 8 else n8))
    grid = (pl.cdiv(n, tm_eff),)

    x_spec = pl.BlockSpec((tm_eff, d_in), lambda i: (i, 0))
    o_spec = pl.BlockSpec((tm_eff, d_out), lambda i: (i, 0))

    def _resident(shape):
        # Constant index_map + single buffer: weights/biases stay resident in
        # VMEM across the whole grid (no wasted double buffering).
        return pl.BlockSpec(shape, lambda i: (0, 0), pipeline_mode=pl.Buffered(1))

    if has_shortcut:
        kernel = functools.partial(_block_kernel_shortcut,
                                   compute_dtype=compute_dtype)
        in_specs = [x_spec,
                    _resident((d_in, d_h)), _resident((1, d_h)),
                    _resident((d_h, d_out)), _resident((1, d_out)),
                    _resident((d_in, d_out))]
        args = (xp, prepared["w0"], prepared["b0"],
                prepared["w1"], prepared["b1"], prepared["ws"])
        w_bytes = (d_in * d_h + d_h * d_out + d_in * d_out) * cb
    else:
        kernel = functools.partial(_block_kernel_identity,
                                   compute_dtype=compute_dtype)
        in_specs = [x_spec,
                    _resident((d_in, d_h)), _resident((1, d_h)),
                    _resident((d_h, d_out)), _resident((1, d_out))]
        args = (xp, prepared["w0"], prepared["b0"],
                prepared["w1"], prepared["b1"])
        w_bytes = (d_in * d_h + d_h * d_out) * cb

    # VMEM budget: resident weights + double-buffered row-tile I/O + in-kernel
    # intermediates, 2x margin, capped at 80% of this chip's physical VMEM.
    b_bytes = (d_h + d_out) * f32
    io_bytes = 2 * tm_eff * (d_in + d_out) * x.dtype.itemsize
    interm_bytes = tm_eff * (d_in * (f32 + cb) + d_h * (f32 + cb) + 2 * d_out * f32)
    budget = w_bytes + b_bytes + io_bytes + interm_bytes
    vmem_cap = int(0.8 * _vmem_capacity_bytes())
    vmem_limit = int(min(vmem_cap, max(32 * 1024 * 1024, 2 * budget)))

    out = pl.pallas_call(
        kernel,
        out_shape=jax.ShapeDtypeStruct((n, d_out), x.dtype),
        grid=grid,
        in_specs=in_specs,
        out_specs=o_spec,
        compiler_params=pltpu.CompilerParams(
            dimension_semantics=("parallel",),
            vmem_limit_bytes=vmem_limit),
    )(*args)
    return out if d_out == size_out else out[:, :size_out]


# ----------------------------------------------------------------------------
# Reference + synthetic parameters
# ----------------------------------------------------------------------------

def resnet_block_fc_ref(x, params):
    """Pure-JAX reference matching the PyTorch forward."""
    net = jnp.maximum(x, 0.0) @ params["w0"] + params["b0"]
    dx = jnp.maximum(net, 0.0) @ params["w1"] + params["b1"]
    x_s = x @ params["ws"] if "ws" in params else x
    return x_s + dx


def init_params(key, size_in, size_out=None, size_h=None):
    """Deterministic synthetic parameters mirroring ResnetBlockFC.__init__."""
    if size_out is None:
        size_out = size_in
    if size_h is None:
        size_h = min(size_in, size_out)
    k0, k1, k2, k3 = jax.random.split(key, 4)
    # PyTorch Linear default: U(-1/sqrt(fan_in), 1/sqrt(fan_in)); weights
    # stored here as (in, out) (transposed vs torch's (out, in)).
    lim0 = 1.0 / jnp.sqrt(size_in)
    lim1 = 1.0 / jnp.sqrt(size_h)
    params = {
        "w0": jax.random.uniform(k0, (size_in, size_h), jnp.float32, -lim0, lim0),
        "b0": jax.random.uniform(k1, (size_h,), jnp.float32, -lim0, lim0),
        # nn.init.zeros_(self.fc_1.weight)
        "w1": jnp.zeros((size_h, size_out), jnp.float32),
        "b1": jax.random.uniform(k2, (size_out,), jnp.float32, -lim1, lim1),
    }
    if size_in != size_out:
        params["ws"] = jax.random.uniform(
            k3, (size_in, size_out), jnp.float32, -lim0, lim0)
    return params


if __name__ == "__main__":
    key = jax.random.PRNGKey(0)
    kx, kp = jax.random.split(key)

    # ---- Case 1: size_in != size_out -> linear (no-bias) shortcut path ----
    N, size_in, size_out = 512, 96, 160        # non-multiples of 128 exercise padding
    x = jax.random.normal(kx, (N, size_in), jnp.float32)
    params = init_params(kp, size_in, size_out)
    ref = resnet_block_fc_ref(x, params)

    # Exact-semantics check (f32 MXU operands).
    prep_f32 = prepare_params(params, compute_dtype=jnp.float32)
    out_f32 = jax.block_until_ready(
        resnet_block_fc(x, prep_f32, size_out=size_out))
    assert out_f32.shape == (N, size_out)
    assert jnp.allclose(out_f32, ref, atol=1e-4, rtol=1e-4)

    # Default bf16 MXU operands (f32 accumulation) — looser tolerance.
    prep_bf16 = prepare_params(params, compute_dtype=jnp.bfloat16)
    out_bf16 = jax.block_until_ready(
        resnet_block_fc(x, prep_bf16, size_out=size_out))
    assert jnp.allclose(out_bf16, ref, atol=3e-2, rtol=3e-2)

    # Extra coverage: non-zero fc_1 weight (kernel is init-agnostic) so both
    # dots in the shortcut path are numerically exercised.
    params_nz = dict(params)
    params_nz["w1"] = 0.05 * jax.random.normal(
        jax.random.PRNGKey(3), (params["w0"].shape[1], size_out), jnp.float32)
    ref_nz = resnet_block_fc_ref(x, params_nz)
    out_nz = jax.block_until_ready(
        resnet_block_fc(x, prepare_params(params_nz, compute_dtype=jnp.float32),
                        size_out=size_out))
    assert jnp.allclose(out_nz, ref_nz, atol=1e-4, rtol=1e-4)

    # ---- Case 2: size_in == size_out -> identity shortcut, ragged N ----
    N2 = 200
    x2 = jax.random.normal(kx, (N2, size_in), jnp.float32)
    params_id = init_params(kp, size_in)
    ref_id = resnet_block_fc_ref(x2, params_id)
    out_id = jax.block_until_ready(
        resnet_block_fc(x2, prepare_params(params_id, compute_dtype=jnp.float32),
                        size_out=size_in))
    assert out_id.shape == (N2, size_in)
    assert jnp.allclose(out_id, ref_id, atol=1e-4, rtol=1e-4)
    out_id_bf = jax.block_until_ready(
        resnet_block_fc(x2, prepare_params(params_id, compute_dtype=jnp.bfloat16),
                        size_out=size_in))
    assert jnp.allclose(out_id_bf, ref_id, atol=3e-2, rtol=3e-2)

    print("KERNEL_OK")
</pallas_src>

<mosaic_0001>
module attributes {stable_mosaic.version = 11 : i64} {
  func.func @_block_kernel_shortcut(%arg0: i32, %arg1: memref<256x128xf32, #tpu.memory_space<vmem>>, %arg2: memref<128x128xf32, #tpu.memory_space<vmem>>, %arg3: memref<1x128xf32, #tpu.memory_space<vmem>>, %arg4: memref<128x256xf32, #tpu.memory_space<vmem>>, %arg5: memref<1x256xf32, #tpu.memory_space<vmem>>, %arg6: memref<128x256xf32, #tpu.memory_space<vmem>>, %arg7: memref<256x256xf32, #tpu.memory_space<vmem>>) attributes {dimension_semantics = [#tpu.dimension_semantics<parallel>], iteration_bounds = array<i64: 2>, scalar_prefetch = 0 : i64, scratch_operands = 0 : i64, tpu.core_type = #tpu.core_type<tc>, window_params = [{transform_indices = @transform_0, window_bounds = array<i64: 256, 128>}, {pipeline_mode = #tpu.pipeline_mode<synchronous>, transform_indices = @transform_1, window_bounds = array<i64: 128, 128>}, {pipeline_mode = #tpu.pipeline_mode<synchronous>, transform_indices = @transform_2, window_bounds = array<i64: 1, 128>}, {pipeline_mode = #tpu.pipeline_mode<synchronous>, transform_indices = @transform_3, window_bounds = array<i64: 128, 256>}, {pipeline_mode = #tpu.pipeline_mode<synchronous>, transform_indices = @transform_4, window_bounds = array<i64: 1, 256>}, {pipeline_mode = #tpu.pipeline_mode<synchronous>, transform_indices = @transform_5, window_bounds = array<i64: 128, 256>}, {transform_indices = @transform_6, window_bounds = array<i64: 256, 256>}]} {
    %c0 = arith.constant 0 : index
    %c0_0 = arith.constant 0 : index
    %0 = vector.load %arg1[%c0, %c0_0] : memref<256x128xf32, #tpu.memory_space<vmem>>, vector<256x128xf32>
    %cst = arith.constant 0.000000e+00 : f32
    %1 = vector.broadcast %cst : f32 to vector<256x128xf32>
    %2 = arith.maximumf %0, %1 : vector<256x128xf32>
    %c0_1 = arith.constant 0 : index
    %c0_2 = arith.constant 0 : index
    %3 = vector.load %arg2[%c0_1, %c0_2] : memref<128x128xf32, #tpu.memory_space<vmem>>, vector<128x128xf32>
    %cst_3 = arith.constant dense<0.000000e+00> : vector<256x128xf32>
    %4 = tpu.matmul %2, %3, %cst_3 {dimension_numbers = #tpu.dot_dimension_numbers<[1], [0], [0], [1], [0, 0, 1, 1], [], []>} : vector<256x128xf32>, vector<128x128xf32>, vector<256x128xf32> -> vector<256x128xf32>
    %c0_4 = arith.constant 0 : index
    %c0_5 = arith.constant 0 : index
    %5 = vector.load %arg3[%c0_4, %c0_5] : memref<1x128xf32, #tpu.memory_space<vmem>>, vector<1x128xf32>
    %6 = vector.broadcast %5 : vector<1x128xf32> to vector<256x128xf32>
    %7 = arith.addf %4, %6 : vector<256x128xf32>
    %cst_6 = arith.constant 0.000000e+00 : f32
    %8 = vector.broadcast %cst_6 : f32 to vector<256x128xf32>
    %9 = arith.maximumf %7, %8 : vector<256x128xf32>
    %c0_7 = arith.constant 0 : index
    %c0_8 = arith.constant 0 : index
    %10 = vector.load %arg4[%c0_7, %c0_8] : memref<128x256xf32, #tpu.memory_space<vmem>>, vector<128x256xf32>
    %cst_9 = arith.constant dense<0.000000e+00> : vector<256x256xf32>
    %11 = tpu.matmul %9, %10, %cst_9 {dimension_numbers = #tpu.dot_dimension_numbers<[1], [0], [0], [1], [0, 0, 1, 1], [], []>} : vector<256x128xf32>, vector<128x256xf32>, vector<256x256xf32> -> vector<256x256xf32>
    %c0_10 = arith.constant 0 : index
    %c0_11 = arith.constant 0 : index
    %12 = vector.load %arg5[%c0_10, %c0_11] : memref<1x256xf32, #tpu.memory_space<vmem>>, vector<1x256xf32>
    %13 = vector.broadcast %12 : vector<1x256xf32> to vector<256x256xf32>
    %14 = arith.addf %11, %13 : vector<256x256xf32>
    %c0_12 = arith.constant 0 : index
    %c0_13 = arith.constant 0 : index
    %15 = vector.load %arg6[%c0_12, %c0_13] : memref<128x256xf32, #tpu.memory_space<vmem>>, vector<128x256xf32>
    %cst_14 = arith.constant dense<0.000000e+00> : vector<256x256xf32>
    %16 = tpu.matmul %0, %15, %cst_14 {dimension_numbers = #tpu.dot_dimension_numbers<[1], [0], [0], [1], [0, 0, 1, 1], [], []>} : vector<256x128xf32>, vector<128x256xf32>, vector<256x256xf32> -> vector<256x256xf32>
    %17 = arith.addf %16, %14 : vector<256x256xf32>
    %c0_15 = arith.constant 0 : index
    %c0_16 = arith.constant 0 : index
    %18 = vector.load %arg7[%c0_15, %c0_16] : memref<256x256xf32, #tpu.memory_space<vmem>>, vector<256x256xf32>
    tpu.vector_store %arg7[%c0_15, %c0_16], %17 {strides = array<i32>} : memref<256x256xf32, #tpu.memory_space<vmem>>, vector<256x256xf32>,
    return
  }
  func.func @transform_0(%arg0: i32) -> (i32, i32) {
    %c0_i32 = arith.constant 0 : i32
    %c0_i32_0 = arith.constant 0 : i32
    return %arg0, %c0_i32 : i32, i32
  }
  func.func @transform_1(%arg0: i32) -> (i32, i32) {
    %c0_i32 = arith.constant 0 : i32
    %c0_i32_0 = arith.constant 0 : i32
    %c0_i32_1 = arith.constant 0 : i32
    return %c0_i32, %c0_i32_0 : i32, i32
  }
  func.func @transform_2(%arg0: i32) -> (i32, i32) {
    %c0_i32 = arith.constant 0 : i32
    %c0_i32_0 = arith.constant 0 : i32
    %c0_i32_1 = arith.constant 0 : i32
    return %c0_i32, %c0_i32_0 : i32, i32
  }
  func.func @transform_3(%arg0: i32) -> (i32, i32) {
    %c0_i32 = arith.constant 0 : i32
    %c0_i32_0 = arith.constant 0 : i32
    %c0_i32_1 = arith.constant 0 : i32
    return %c0_i32, %c0_i32_0 : i32, i32
  }
  func.func @transform_4(%arg0: i32) -> (i32, i32) {
    %c0_i32 = arith.constant 0 : i32
    %c0_i32_0 = arith.constant 0 : i32
    %c0_i32_1 = arith.constant 0 : i32
    return %c0_i32, %c0_i32_0 : i32, i32
  }
  func.func @transform_5(%arg0: i32) -> (i32, i32) {
    %c0_i32 = arith.constant 0 : i32
    %c0_i32_0 = arith.constant 0 : i32
    %c0_i32_1 = arith.constant 0 : i32
    return %c0_i32, %c0_i32_0 : i32, i32
  }
  func.func @transform_6(%arg0: i32) -> (i32, i32) {
    %c0_i32 = arith.constant 0 : i32
    %c0_i32_0 = arith.constant 0 : i32
    return %arg0, %c0_i32 : i32, i32
  }
}

</mosaic_0001>

<bundles_post_ra>
// kernel: resnet_block_fc.1
= control target key start
LH: loop header
LB: loop body
LE: loop exit
PB: predicated region body
PF: predicated region fallthrough
CT: control target
= control target key end

     0   :  { %s1748_s21 = smov 0   ;;  %s2605_s0 = inlined_call_operand.vmem [shape: f32[512,128], index: 0, kind: input, shape index: {}]   ;;  %s2606_s1 = inlined_call_operand.vmem [shape: f32[128,128], index: 1, kind: input, shape index: {}]   ;;  %s2607_s2 = inlined_call_operand.vmem [shape: f32[1,128], index: 2, kind: input, shape index: {}]   ;;  %s2608_s3 = inlined_call_operand.vmem [shape: f32[128,256], index: 3, kind: input, shape index: {}]   ;;  %s2609_s4 = inlined_call_operand.vmem [shape: f32[1,256], index: 4, kind: input, shape index: {}]   ;;  %s2610_s5 = inlined_call_operand.vmem [shape: f32[128,256], index: 5, kind: input, shape index: {}]   ;;  %s2611_s6 = inlined_call_operand.vmem [shape: f32[512,256], index: 6, kind: output, shape index: {}]  }
   0x1 LB: > { %s1313_s22 = sadd.s32 4294967295, %s1710_s21   ;;  %p1317_p0 = scmp.ge.s32.totalorder %s1710_s21, 1  ;;  %s1710_s21 = sphi %s1748_s21, %s16_s21  }
   0x2   : > { %p213_p1 = scmp.lt.s32.totalorder %s1710_s21, 3 }
   0x4   : > { %p214_p2 = pnand %p1317_p0, %p213_p1 }
   0x5   : > { %v321_v0 = vld [vmem:[%s2606_s1] sm:$0xff] (!%p214_p2)  ;;  %v322_v1 = vld [vmem:[%s2606_s1 + $0x8] sm:$0xff] (!%p214_p2)  ;;  %v323_v2 = vld [vmem:[%s2606_s1 + $0x10] sm:$0xff] (!%p214_p2)  ;;  %s1318_s29 = sshll.u32 (!%p214_p2), %s1313_s22, 5 }
   0x6   : > { %217 = sbr.rel (%p214_p2) target bundleno = 677 (0x2a5), region = 44  ;;  %v1455_v3 = vpack.c.bf16 (!%p214_p2), %v322_v1, %v321_v0  ;;  %v324_v4 = vld [vmem:[%s2606_s1 + $0x18] sm:$0xff] (!%p214_p2)  ;;  %p245_p3 = scmp.lt.s32.totalorder (!%p214_p2), %s1318_s29, 63  ;;  %v325_v6 = vld [vmem:[%s2606_s1 + $0x20] sm:$0xff] (!%p214_p2)  ;;  %v326_v7 = vld [vmem:[%s2606_s1 + $0x28] sm:$0xff] (!%p214_p2) }
   0x7   : > { %v1459_v5 = vpack.c.bf16 (!%p214_p2), %v324_v4, %v323_v2  ;;  %v1463_v8 = vpack.c.bf16 (!%p214_p2), %v326_v7, %v325_v6  ;;  %v327_v9 = vld [vmem:[%s2606_s1 + $0x30] sm:$0xff] (!%p214_p2)  ;;  %v602_v10 = vld [vmem:[%s2608_s3 + $0x8] sm:$0xff] (!%p214_p2)  ;;  %v604_v11 = vld [vmem:[%s2608_s3 + $0x18] sm:$0xff] (!%p214_p2) }
   0x8   : > { %1456 = vmatprep.subr.bf16.mxu0 (!%p214_p2), %v1455_v3  ;;  %v328_v12 = vld [vmem:[%s2606_s1 + $0x38] sm:$0xff] (!%p214_p2)  ;;  %v1794_v13 = vpack.c.bf16 (!%p214_p2), %v604_v11, %v602_v10  ;;  %v601_v14 = vld [vmem:[%s2608_s3] sm:$0xff] (!%p214_p2)  ;;  %v603_v15 = vld [vmem:[%s2608_s3 + $0x10] sm:$0xff] (!%p214_p2) }
   0x9   : > { %1458 = vmatpush3.bf16.msra.mxu0 (!%p214_p2), %v1455_v3  ;;  %v1805_v17 = vpack.c.bf16 (!%p214_p2), %v603_v15, %v601_v14  ;;  %v1467_v19 = vpack.c.bf16 (!%p214_p2), %v328_v12, %v327_v9  ;;  %v329_v20 = vld [vmem:[%s2606_s1 + $0x40] sm:$0xff] (!%p214_p2)  ;;  %v330_v21 = vld [vmem:[%s2606_s1 + $0x48] sm:$0xff] (!%p214_p2)  ;;  %v331_v23 = vld [vmem:[%s2606_s1 + $0x50] sm:$0xff] (!%p214_p2) }
   0xa   : > { %1460 = vmatprep.subr.bf16.mxu0 (!%p214_p2), %v1459_v5  ;;  %1551 = vmatprep.subr.bf16.mxu1 (!%p214_p2), %v1794_v13  ;;  %v1471_v22 = vpack.c.bf16 (!%p214_p2), %v330_v21, %v329_v20  ;;  %v332_v24 = vld [vmem:[%s2606_s1 + $0x58] sm:$0xff] (!%p214_p2)  ;;  %v606_v25 = vld [vmem:[%s2608_s3 + $0x28] sm:$0xff] (!%p214_p2)  ;;  %v333_v27 = vld [vmem:[%s2606_s1 + $0x60] sm:$0xff] (!%p214_p2) }
   0xb   : > { %1559 = vmatpush1.bf16.msra.mxu1 (!%p214_p2), %v1805_v17  ;;  %v1475_v26 = vpack.c.bf16 (!%p214_p2), %v332_v24, %v331_v23  ;;  %v334_v28 = vld [vmem:[%s2606_s1 + $0x68] sm:$0xff] (!%p214_p2)  ;;  %v608_v29 = vld [vmem:[%s2608_s3 + $0x38] sm:$0xff] (!%p214_p2)  ;;  %v605_v31 = vld [vmem:[%s2608_s3 + $0x20] sm:$0xff] (!%p214_p2) }
   0xc   : > { %v1834_v30 = vpack.c.bf16 (!%p214_p2), %v608_v29, %v606_v25  ;;  %v607_v32 = vld [vmem:[%s2608_s3 + $0x30] sm:$0xff] (!%p214_p2)  ;;  %v610_v33 = vld [vmem:[%s2608_s3 + $0x48] sm:$0xff] (!%p214_p2)  ;;  %v612_v35 = vld [vmem:[%s2608_s3 + $0x58] sm:$0xff] (!%p214_p2)  ;;  %v1479_v39 = vpack.c.bf16 (!%p214_p2), %v334_v28, %v333_v27 }
   0xd   : > { %s2613_s29 = smov (!%p245_p3, %s1318_s29), 63  ;;  %1462 = vmatpush3.bf16.msra.mxu0 %v1459_v5  ;;  %v1845_v34 = vpack.c.bf16 %v607_v32, %v605_v31  ;;  %v1850_v36 = vpack.c.bf16 %v612_v35, %v610_v33  ;;  %v609_v37 = vld [vmem:[%s2608_s3 + $0x40] sm:$0xff]  ;;  %v611_v38 = vld [vmem:[%s2608_s3 + $0x50] sm:$0xff]  ;;  %v614_v40 = vld [vmem:[%s2608_s3 + $0x68] sm:$0xff] }
   0xe   : > { %s1319_s14 = sshll.u32 %s2613_s29, 3  ;;  %1464 = vmatprep.subr.bf16.mxu0 %v1463_v8  ;;  %1552 = vmatprep.subr.bf16.mxu1 %v1834_v30  ;;  %v616_v41 = vld [vmem:[%s2608_s3 + $0x78] sm:$0xff]  ;;  %v335_v42 = vld [vmem:[%s2606_s1 + $0x70] sm:$0xff]  ;;  %v1873_v44 = vpack.c.bf16 %v611_v38, %v609_v37  ;;  %v613_v46 = vld [vmem:[%s2608_s3 + $0x60] sm:$0xff]  ;;  %s1326_s16 = sshll.u32 %s2613_s29, 4 }
   0xf   : > { %s1792_s24 = scalar_lea.vmem %s2605_s0, %s1319_s14  ;;  %1560 = vmatpush1.bf16.msra.mxu1 %v1845_v34  ;;  %v336_v43 = vld [vmem:[%s2606_s1 + $0x78] sm:$0xff]  ;;  %v1875_v45 = vpack.c.bf16 %v616_v41, %v614_v40  ;;  %v615_v47 = vld [vmem:[%s2608_s3 + $0x70] sm:$0xff]  ;;  %v618_v49 = vld [vmem:[%s2608_s3 + $0x88] sm:$0xff]  ;;  %s2416_s19 = scalar_lea.vmem %s2611_s6, %s1326_s16 }
  0x10   : > { %v1803_v16 = vld [vmem:[%s1792_s24] sm:$0xff]  ;;  %1553 = vmatprep.subr.bf16.mxu1 %v1850_v36  ;;  %v1483_v48 = vpack.c.bf16 %v336_v43, %v335_v42  ;;  %v620_v50 = vld [vmem:[%s2608_s3 + $0x98] sm:$0xff]  ;;  %v1501_v51 = vpack.c.bf16 %v615_v47, %v613_v46  ;;  %v1892_v52 = vld [vmem:[%s1792_s24 + $0x8] sm:$0xff] }
  0x11   : > { %v289_v18 = vmax.f32 %v1803_v16, 0.0  ;;  %1466 = vmatpush3.bf16.msra.mxu0 %v1463_v8  ;;  %v1503_v53 = vpack.c.bf16 %v620_v50, %v618_v49  ;;  %v617_v54 = vld [vmem:[%s2608_s3 + $0x80] sm:$0xff]  ;;  %v619_v55 = vld [vmem:[%s2608_s3 + $0x90] sm:$0xff]  ;;  %v622_v57 = vld [vmem:[%s2608_s3 + $0xa8] sm:$0xff]  ;;  %v290_v59 = vmax.f32 %v1892_v52, 0.0 }
  0x12   : > { %1468 = vmatprep.subr.bf16.mxu0 %v1467_v19  ;;  %v1901_v56 = vld [vmem:[%s1792_s24 + $0x10] sm:$0xff]  ;;  %v624_v58 = vld [vmem:[%s2608_s3 + $0xb8] sm:$0xff]  ;;  %v1505_v60 = vpack.c.bf16 %v619_v55, %v617_v54  ;;  %v621_v0 = vld [vmem:[%s2608_s3 + $0xa0] sm:$0xff] }
  0x13   : > { %1407 = vmatprep.mubr.f32.mxu0 %v289_v18  ;;  %1561 = vmatpush1.bf16.msra.mxu1 %v1873_v44  ;;  %v291_v61 = vmax.f32 %v1901_v56, 0.0  ;;  %v1912_v62 = vld [vmem:[%s1792_s24 + $0x18] sm:$0xff]  ;;  %v1507_v63 = vpack.c.bf16 %v624_v58, %v622_v57  ;;  %v623_v1 = vld [vmem:[%s2608_s3 + $0xb0] sm:$0xff]  ;;  %v1921_v2 = vld [vmem:[%s1792_s24 + $0x20] sm:$0xff] }
  0x14   : > { %1554 = vmatprep.subr.bf16.mxu1 %v1875_v45  ;;  %v626_v3 = vld [vmem:[%s2608_s3 + $0xc8] sm:$0xff]  ;;  %v628_v4 = vld [vmem:[%s2608_s3 + $0xd8] sm:$0xff]  ;;  %v292_v5 = vmax.f32 %v1912_v62, 0.0  ;;  %v1509_v6 = vpack.c.bf16 %v623_v1, %v621_v0  ;;  %v293_v7 = vmax.f32 %v1921_v2, 0.0  ;;  %v625_v10 = vld [vmem:[%s2608_s3 + $0xc0] sm:$0xff] }
  0x15   : > { %1470 = vmatpush3.bf16.msra.mxu0 %v1467_v19  ;;  %v1933_v8 = vld [vmem:[%s1792_s24 + $0x28] sm:$0xff]  ;;  %v1511_v9 = vpack.c.bf16 %v628_v4, %v626_v3  ;;  %v627_v11 = vld [vmem:[%s2608_s3 + $0xd0] sm:$0xff]  ;;  %v1953_v18 = vld [vmem:[%s1792_s24 + $0x40] sm:$0xff] }
  0x16   : > { %1472 = vmatprep.subr.bf16.mxu0 %v1471_v22  ;;  %v1943_v12 = vld [vmem:[%s1792_s24 + $0x30] sm:$0xff]  ;;  %v1513_v14 = vpack.c.bf16 %v627_v11, %v625_v10  ;;  %v297_v20 = vmax.f32 %v1953_v18, 0.0  ;;  %v1959_v21 = vld [vmem:[%s1792_s24 + $0x48] sm:$0xff]  ;;  %v1969_v25 = vld [vmem:[%s1792_s24 + $0x58] sm:$0xff] }
  0x17   : > { %1562 = vmatpush1.bf16.msra.mxu1 %v1501_v51  ;;  %v295_v15 = vmax.f32 %v1943_v12, 0.0  ;;  %v298_v23 = vmax.f32 %v1959_v21, 0.0  ;;  %v300_v27 = vmax.f32 %v1969_v25, 0.0  ;;  %v1977_v29 = vld [vmem:[%s1792_s24 + $0x68] sm:$0xff]  ;;  %v1985_v33 = vld [vmem:[%s1792_s24 + $0x78] sm:$0xff]  ;;  %v1996_v38 = vld [vmem:[%s1792_s24 + $0x90] sm:$0xff] }
  0x18   : > { %1555 = vmatprep.subr.bf16.mxu1 %v1503_v53  ;;  %v302_v31 = vmax.f32 %v1977_v29, 0.0  ;;  %v304_v35 = vmax.f32 %v1985_v33, 0.0  ;;  %v1993_v37 = vld [vmem:[%s1792_s24 + $0x88] sm:$0xff]  ;;  %v307_v40 = vmax.f32 %v1996_v38, 0.0  ;;  %v2001_v41 = vld [vmem:[%s1792_s24 + $0x98] sm:$0xff]  ;;  %v2004_v42 = vld [vmem:[%s1792_s24 + $0xa0] sm:$0xff] }
  0x19   : > { %1474 = vmatpush3.bf16.msra.mxu0 %v1471_v22  ;;  %v1963_v22 = vld [vmem:[%s1792_s24 + $0x50] sm:$0xff]  ;;  %v308_v43 = vmax.f32 %v2001_v41, 0.0  ;;  %v2017_v49 = vld [vmem:[%s1792_s24 + $0xb8] sm:$0xff]  ;;  %v2020_v50 = vld [vmem:[%s1792_s24 + $0xc0] sm:$0xff] }
  0x1a   : > { %1476 = vmatprep.subr.bf16.mxu0 %v1475_v26  ;;  %v299_v24 = vmax.f32 %v1963_v22, 0.0  ;;  %v2012_v46 = vld [vmem:[%s1792_s24 + $0xb0] sm:$0xff]  ;;  %v2025_v54 = vld [vmem:[%s1792_s24 + $0xc8] sm:$0xff]  ;;  %v629_v11 = vld [vmem:[%s2608_s3 + $0xe0] sm:$0xff] }
  0x1b   : > { %1563 = vmatpush1.bf16.msra.mxu1 %v1505_v60  ;;  %v2028_v55 = vld [vmem:[%s1792_s24 + $0xd0] sm:$0xff]  ;;  %v314_v57 = vmax.f32 %v2025_v54, 0.0  ;;  %v2041_v0 = vld [vmem:[%s1792_s24 + $0xe8] sm:$0xff] }
  0x1c   : > { %1556 = vmatprep.subr.bf16.mxu1 %v1507_v63  ;;  %v315_v58 = vmax.f32 %v2028_v55, 0.0  ;;  %v2044_v1 = vld [vmem:[%s1792_s24 + $0xf0] sm:$0xff]  ;;  %v318_v3 = vmax.f32 %v2041_v0, 0.0 }
  0x1d   : > { %1478 = vmatpush3.bf16.msra.mxu0 %v1475_v26  ;;  %v1972_v26 = vld [vmem:[%s1792_s24 + $0x60] sm:$0xff]  ;;  %v319_v4 = vmax.f32 %v2044_v1, 0.0 }
  0x1e   : > { %1480 = vmatprep.subr.bf16.mxu0 %v1479_v39  ;;  %v301_v28 = vmax.f32 %v1972_v26, 0.0 }
  0x1f   : > { %1564 = vmatpush1.bf16.msra.mxu1 %v1509_v6 }
  0x20   : > { %1557 = vmatprep.subr.bf16.mxu1 %v1511_v9 }
  0x21   : > { %1482 = vmatpush3.bf16.msra.mxu0 %v1479_v39  ;;  %v306_v39 = vmax.f32 %v1993_v37, 0.0 }
  0x22   : > { %1484 = vmatprep.subr.bf16.mxu0 %v1483_v48 }
  0x23   : > { %1565 = vmatpush1.bf16.msra.mxu1 %v1513_v14 }
  0x25   : > { %1486 = vmatpush3.bf16.msra.mxu0 %v1483_v48  ;;  %v311_v48 = vmax.f32 %v2012_v46, 0.0 }
  0x26   : > { %1488 = vmatprep.subr.bf16.mxu0 %v1794_v13  ;;  %v294_v13 = vmax.f32 %v1933_v8, 0.0 }
  0x28   : > { %1408 = vmatmul.mubr.f32.vlgmr.msra.gmra.mrb[0].mxu0 %v290_v59  ;;  %v2033_v59 = vld [vmem:[%s1792_s24 + $0xd8] sm:$0xff] }
  0x29   : > { %1410 = vmatprep.mubr.f32.mxu0 %v291_v61  ;;  %1490 = vmatpush1.bf16.msra.mxu0 %v1805_v17  ;;  %v1949_v17 = vld [vmem:[%s1792_s24 + $0x38] sm:$0xff]  ;;  %v316_v61 = vmax.f32 %v2033_v59, 0.0 }
  0x2a   : > { %1492 = vmatprep.subr.bf16.mxu0 %v1834_v30  ;;  %v296_v19 = vmax.f32 %v1949_v17, 0.0  ;;  %v1980_v30 = vld [vmem:[%s1792_s24 + $0x70] sm:$0xff] }
  0x2b   : > { %v303_v32 = vmax.f32 %v1980_v30, 0.0 }
  0x2c   : > { %1411 = vmatmul.mubr.f32.gmra.mrb[2].mxu0 %v292_v5  ;;  %v2049_v5 = vld [vmem:[%s1792_s24 + $0xf8] sm:$0xff] }
  0x2d   : > { %1413 = vmatprep.mubr.f32.mxu0 %v293_v7  ;;  %1494 = vmatpush1.bf16.msra.mxu0 %v1845_v34  ;;  %v1988_v34 = vld [vmem:[%s1792_s24 + $0x80] sm:$0xff]  ;;  %v630_v7 = vld [vmem:[%s2608_s3 + $0xe8] sm:$0xff] }
  0x2e   : > { %1496 = vmatprep.subr.bf16.mxu0 %v1850_v36  ;;  %v305_v36 = vmax.f32 %v1988_v34, 0.0 }
  0x30   : > { %1414 = vmatmul.mubr.f32.gmra.mrb[4].mxu0 %v294_v13  ;;  %v631_v13 = vld [vmem:[%s2608_s3 + $0xf0] sm:$0xff] }
  0x31   : > { %1416 = vmatprep.mubr.f32.mxu0 %v295_v15  ;;  %1498 = vmatpush1.bf16.msra.mxu0 %v1873_v44  ;;  %v309_v44 = vmax.f32 %v2004_v42, 0.0  ;;  %v1712_v15 = vmov 0.0  }
  0x32   : > { %1500 = vmatprep.subr.bf16.mxu0 %v1875_v45  ;;  %v2009_v45 = vld [vmem:[%s1792_s24 + $0xa8] sm:$0xff]  ;;  %853 = vmatprep.mubr.f32.mxu1 %v1712_v15 }
  0x33   : > { %v310_v47 = vmax.f32 %v2009_v45, 0.0 }
  0x34   : > { %1417 = vmatmul.mubr.f32.gmra.mrb[6].mxu0 %v296_v19  ;;  %v903_v19 = vld [vmem:[%s2610_s5 + $0x8] sm:$0xff] }
  0x35   : > { %1419 = vmatprep.mubr.f32.mxu0 %v297_v20  ;;  %1502 = vmatpush1.bf16.msra.mxu0 %v1501_v51  ;;  %v312_v51 = vmax.f32 %v2017_v49, 0.0  ;;  %v905_v20 = vld [vmem:[%s2610_s5 + $0x18] sm:$0xff] }
  0x36   : > { %1504 = vmatprep.subr.bf16.mxu0 %v1503_v53  ;;  %v313_v53 = vmax.f32 %v2020_v50, 0.0 }
  0x38   : > { %1420 = vmatmul.mubr.f32.gmra.mrb[8].mxu0 %v298_v23  ;;  %v1519_v23 = vpack.c.bf16 %v905_v20, %v903_v19 }
  0x39   : > { %1422 = vmatprep.mubr.f32.mxu0 %v299_v24  ;;  %1506 = vmatpush1.bf16.msra.mxu0 %v1505_v60  ;;  %v2036_v60 = vld [vmem:[%s1792_s24 + $0xe0] sm:$0xff] }
  0x3a   : > { %1508 = vmatprep.subr.bf16.mxu0 %v1507_v63  ;;  %v317_v63 = vmax.f32 %v2036_v60, 0.0  ;;  %v2075_v24 = vld [vmem:[%s2607_s2] ss:$0 sm:$0xff] }
  0x3c   : > { %1423 = vmatmul.mubr.f32.gmra.mrb[10].mxu0 %v300_v27 }
  0x3d   : > { %1425 = vmatprep.mubr.f32.mxu0 %v301_v28  ;;  %1510 = vmatpush1.bf16.msra.mxu0 %v1509_v6  ;;  %v320_v6 = vmax.f32 %v2049_v5, 0.0 }
  0x3e   : > { %1512 = vmatprep.subr.bf16.mxu0 %v1511_v9  ;;  %v632_v9 = vld [vmem:[%s2608_s3 + $0xf8] sm:$0xff] }
  0x3f   : > { %v1515_v10 = vpack.c.bf16 %v632_v9, %v630_v7 }
  0x40   : > { %1426 = vmatmul.mubr.f32.gmra.mrb[12].mxu0 %v302_v31 }
  0x41   : > { %1428 = vmatprep.mubr.f32.mxu0 %v303_v32  ;;  %1514 = vmatpush1.bf16.msra.mxu0 %v1513_v14  ;;  %v1517_v14 = vpack.c.bf16 %v631_v13, %v629_v11 }
  0x42   : > { %1516 = vmatprep.subr.bf16.mxu0 %v1515_v10  ;;  %1558 = vmatprep.subr.bf16.mxu1 %v1515_v10 }
  0x43   : > { %1566 = vmatpush1.bf16.msra.mxu1 %v1517_v14 }
  0x44   : > { %1429 = vmatmul.mubr.f32.gmra.mrb[14].mxu0 %v304_v35  ;;  %1520 = vmatprep.subr.bf16.mxu1 %v1519_v23 }
  0x45   : > { %1431 = vmatprep.mubr.f32.mxu0 %v305_v36  ;;  %1518 = vmatpush1.bf16.msra.mxu0 %v1517_v14 }
  0x48   : > { %1432 = vmatmul.mubr.f32.gmra.mrb[16].mxu0 %v306_v39 }
  0x49   : > { %1434 = vmatprep.mubr.f32.mxu0 %v307_v40 }
  0x4c   : > { %1435 = vmatmul.mubr.f32.gmra.mrb[18].mxu0 %v308_v43 }
  0x4d   : > { %1437 = vmatprep.mubr.f32.mxu0 %v309_v44 }
  0x50   : > { %1438 = vmatmul.mubr.f32.gmra.mrb[20].mxu0 %v310_v47 }
  0x51   : > { %1440 = vmatprep.mubr.f32.mxu0 %v311_v48 }
  0x54   : > { %1441 = vmatmul.mubr.f32.gmra.mrb[22].mxu0 %v312_v51 }
  0x55   : > { %1443 = vmatprep.mubr.f32.mxu0 %v313_v53 }
  0x58   : > { %1444 = vmatmul.mubr.f32.gmra.mrb[24].mxu0 %v314_v57 }
  0x59   : > { %1446 = vmatprep.mubr.f32.mxu0 %v315_v58 }
  0x5c   : > { %1447 = vmatmul.mubr.f32.gmra.mrb[26].mxu0 %v316_v61 }
  0x5d   : > { %1449 = vmatprep.mubr.f32.mxu0 %v317_v63 }
  0x60   : > { %1450 = vmatmul.mubr.f32.gmra.mrb[28].mxu0 %v318_v3 }
  0x61   : > { %1452 = vmatprep.mubr.f32.mxu0 %v319_v4 }
  0x64   : > { %1453 = vmatmul.mubr.f32.gmra.mrb[30].mxu0 %v320_v6 }
  0x65   : > { %709 = vmatprep.mubr.f32.mxu0 %v1712_v15 }
  0xfb   : > { %v1409_v27 = vpop.f32.mrb[0].mxu0 }
  0xfc   : > { %v410_v28 = vpop.f32.mrb[1].mxu0  ;;  %v416_v32 = vadd.f32 %v1409_v27, %v2075_v24 }
  0xfd   : > { %v411_v31 = vadd.f32 %v2075_v24, %v410_v28 }
  0xfe   : > { %v570_v40 = vmax.f32 %v416_v32, 0.0 }
  0xff   : > { %v569_v35 = vmax.f32 %v411_v31, 0.0  ;;  %v1412_v36 = vpop.f32.mrb[2].mxu0 }
 0x100   : > { %v420_v39 = vpop.f32.mrb[3].mxu0  ;;  %v426_v48 = vadd.f32 %v1412_v36, %v2075_v24 }
 0x101   : > { %710 = vmatmul.mubr.f32.vlgmr.msra.gmra.mrb[32].mxu0 %v569_v35  ;;  %v421_v43 = vadd.f32 %v2075_v24, %v420_v39 }
 0x102   : > { %715 = vmatprep.mubr.f32.mxu0 %v1712_v15  ;;  %v572_v58 = vmax.f32 %v426_v48, 0.0 }
 0x103   : > { %v1415_v44 = vpop.f32.mrb[4].mxu0  ;;  %v571_v51 = vmax.f32 %v421_v43, 0.0 }
 0x104   : > { %v430_v47 = vpop.f32.mrb[5].mxu0  ;;  %v436_v4 = vadd.f32 %v1415_v44, %v2075_v24 }
 0x105   : > { %716 = vmatmul.mubr.f32.gmra.mrb[34].mxu0 %v570_v40  ;;  %v431_v61 = vadd.f32 %v2075_v24, %v430_v47 }
 0x106   : > { %721 = vmatprep.mubr.f32.mxu0 %v1712_v15  ;;  %v574_v10 = vmax.f32 %v436_v4, 0.0 }
 0x107   : > { %v1418_v53 = vpop.f32.mrb[6].mxu0  ;;  %v573_v6 = vmax.f32 %v431_v61, 0.0 }
 0x108   : > { %v440_v57 = vpop.f32.mrb[7].mxu0  ;;  %v446_v19 = vadd.f32 %v1418_v53, %v2075_v24 }
 0x109   : > { %722 = vmatmul.mubr.f32.gmra.mrb[36].mxu0 %v571_v51  ;;  %v441_v11 = vadd.f32 %v2075_v24, %v440_v57 }
 0x10a   : > { %727 = vmatprep.mubr.f32.mxu0 %v1712_v15  ;;  %v576_v28 = vmax.f32 %v446_v19, 0.0 }
 0x10b   : > { %v1421_v63 = vpop.f32.mrb[8].mxu0  ;;  %v575_v20 = vmax.f32 %v441_v11, 0.0 }
 0x10c   : > { %v450_v3 = vpop.f32.mrb[9].mxu0  ;;  %v456_v40 = vadd.f32 %v1421_v63, %v2075_v24 }
 0x10d   : > { %728 = vmatmul.mubr.f32.gmra.mrb[38].mxu0 %v572_v58  ;;  %v451_v31 = vadd.f32 %v2075_v24, %v450_v3 }
 0x10e   : > { %733 = vmatprep.mubr.f32.mxu0 %v1712_v15  ;;  %v578_v53 = vmax.f32 %v456_v40, 0.0  ;;  %v909_v40 = vld [vmem:[%s2610_s5 + $0x38] sm:$0xff] }
 0x10f   : > { %v1424_v7 = vpop.f32.mrb[10].mxu0  ;;  %v577_v43 = vmax.f32 %v451_v31, 0.0 }
 0x110   : > { %v460_v9 = vpop.f32.mrb[11].mxu0  ;;  %v466_v4 = vadd.f32 %v1424_v7, %v2075_v24 }
 0x111   : > { %734 = vmatmul.mubr.f32.gmra.mrb[40].mxu0 %v573_v6  ;;  %v461_v57 = vadd.f32 %v2075_v24, %v460_v9 }
 0x112   : > { %739 = vmatprep.mubr.f32.mxu0 %v1712_v15 }
 0x113   : > { %v1427_v13 = vpop.f32.mrb[12].mxu0  ;;  %v579_v6 = vmax.f32 %v461_v57, 0.0 }
 0x114   : > { %v470_v14 = vpop.f32.mrb[13].mxu0 }
 0x115   : > { %740 = vmatmul.mubr.f32.gmra.mrb[42].mxu0 %v574_v10  ;;  %v471_v31 = vadd.f32 %v2075_v24, %v470_v14 }
 0x116   : > { %745 = vmatprep.mubr.f32.mxu0 %v1712_v15 }
 0x117   : > { %v2091_v23 = vpop.f32.mrb[14].mxu0  ;;  %v581_v57 = vmax.f32 %v471_v31, 0.0 }
 0x118   : > { %v2093_v27 = vpop.f32.mrb[15].mxu0 }
 0x119   : > { %746 = vmatmul.mubr.f32.gmra.mrb[44].mxu0 %v575_v20  ;;  %v902_v20 = vld [vmem:[%s2610_s5] sm:$0xff] }
 0x11a   : > { %751 = vmatprep.mubr.f32.mxu0 %v1712_v15 }
 0x11b   : > { %v1433_v32 = vpop.f32.mrb[16].mxu0 }
 0x11c   : > { %v2098_v35 = vadd.f32 %v1433_v32, %v2075_v24  ;;  %v490_v36 = vpop.f32.mrb[17].mxu0  ;;  %v904_v32 = vld [vmem:[%s2610_s5 + $0x10] sm:$0xff] }
 0x11d   : > { %v2101_v39 = vadd.f32 %v2075_v24, %v490_v36  ;;  %752 = vmatmul.mubr.f32.gmra.mrb[46].mxu0 %v576_v28  ;;  %v580_v28 = vmax.f32 %v466_v4, 0.0  ;;  %v907_v36 = vld [vmem:[%s2610_s5 + $0x28] sm:$0xff]  ;;  %v1521_v14 = vpack.c.bf16 %v904_v32, %v902_v20  ;;  %v481_v32 = vadd.f32 %v2075_v24, %v2093_v27 }
 0x11e   : > { %757 = vmatprep.mubr.f32.mxu0 %v1712_v15  ;;  %v911_v20 = vld [vmem:[%s2610_s5 + $0x48] sm:$0xff] }
 0x11f   : > { %v1436_v44 = vpop.f32.mrb[18].mxu0  ;;  %v915_v27 = vld [vmem:[%s2610_s5 + $0x68] sm:$0xff] }
 0x120   : > { %v2106_v47 = vadd.f32 %v1436_v44, %v2075_v24  ;;  %v500_v48 = vpop.f32.mrb[19].mxu0 }
 0x121   : > { %v2109_v51 = vadd.f32 %v2075_v24, %v500_v48  ;;  %758 = vmatmul.mubr.f32.gmra.mrb[48].mxu0 %v577_v43  ;;  %v1523_v48 = vpack.c.bf16 %v909_v40, %v907_v36 }
 0x122   : > { %763 = vmatprep.mubr.f32.mxu0 %v1712_v15 }
 0x123   : > { %v1439_v58 = vpop.f32.mrb[20].mxu0 }
 0x124   : > { %v2114_v61 = vadd.f32 %v1439_v58, %v2075_v24  ;;  %v510_v63 = vpop.f32.mrb[21].mxu0 }
 0x125   : > { %v2117_v3 = vadd.f32 %v2075_v24, %v510_v63  ;;  %764 = vmatmul.mubr.f32.gmra.mrb[50].mxu0 %v578_v53  ;;  %v476_v53 = vadd.f32 %v1427_v13, %v2075_v24  ;;  %v913_v13 = vld [vmem:[%s2610_s5 + $0x58] sm:$0xff] }
 0x126   : > { %769 = vmatprep.mubr.f32.mxu0 %v1712_v15  ;;  %v1527_v40 = vpack.c.bf16 %v913_v13, %v911_v20 }
 0x127   : > { %v1442_v10 = vpop.f32.mrb[22].mxu0 }
 0x128   : > { %v2122_v11 = vadd.f32 %v1442_v10, %v2075_v24  ;;  %v520_v19 = vpop.f32.mrb[23].mxu0  ;;  %v908_v10 = vld [vmem:[%s2610_s5 + $0x30] sm:$0xff] }
 0x129   : > { %v2125_v9 = vadd.f32 %v2075_v24, %v520_v19  ;;  %770 = vmatmul.mubr.f32.gmra.mrb[52].mxu0 %v579_v6  ;;  %v906_v6 = vld [vmem:[%s2610_s5 + $0x20] sm:$0xff] }
 0x12a   : > { %775 = vmatprep.mubr.f32.mxu0 %v1712_v15  ;;  %v1525_v31 = vpack.c.bf16 %v908_v10, %v906_v6  ;;  %v486_v10 = vadd.f32 %v2091_v23, %v2075_v24  ;;  %v919_v23 = vld [vmem:[%s2610_s5 + $0x88] sm:$0xff] }
 0x12b   : > { %v1445_v7 = vpop.f32.mrb[24].mxu0 }
 0x12c   : > { %v530_v43 = vpop.f32.mrb[25].mxu0  ;;  %v536_v58 = vadd.f32 %v1445_v7, %v2075_v24  ;;  %v582_v7 = vmax.f32 %v476_v53, 0.0 }
 0x12d   : > { %v531_v44 = vadd.f32 %v2075_v24, %v530_v43  ;;  %776 = vmatmul.mubr.f32.gmra.mrb[54].mxu0 %v580_v28  ;;  %v910_v43 = vld [vmem:[%s2610_s5 + $0x40] sm:$0xff] }
 0x12e   : > { %781 = vmatprep.mubr.f32.mxu0 %v1712_v15  ;;  %v594_v36 = vmax.f32 %v536_v58, 0.0 }
 0x12f   : > { %v593_v63 = vmax.f32 %v531_v44, 0.0  ;;  %v1448_v4 = vpop.f32.mrb[26].mxu0  ;;  %v912_v44 = vld [vmem:[%s2610_s5 + $0x50] sm:$0xff] }
 0x130   : > { %v540_v19 = vpop.f32.mrb[27].mxu0  ;;  %v1529_v6 = vpack.c.bf16 %v912_v44, %v910_v43  ;;  %v546_v20 = vadd.f32 %v1448_v4, %v2075_v24  ;;  %v921_v4 = vld [vmem:[%s2610_s5 + $0x98] sm:$0xff]  ;;  %v584_v44 = vmax.f32 %v486_v10, 0.0 }
 0x131   : > { %782 = vmatmul.mubr.f32.gmra.mrb[56].mxu0 %v581_v57  ;;  %854 = vmatmul.mubr.f32.vlgmr.msra.gmra.mrb[0].mxu1 %v593_v63  ;;  %v541_v28 = vadd.f32 %v2075_v24, %v540_v19  ;;  %v583_v19 = vmax.f32 %v481_v32, 0.0 }
 0x132   : > { %1522 = vmatpush1.bf16.msra.mxu1 %v1521_v14  ;;  %787 = vmatprep.mubr.f32.mxu0 %v1712_v15 }
 0x133   : > { %859 = vmatprep.mubr.f32.mxu1 %v1712_v15  ;;  %1524 = vmatprep.subr.bf16.mxu1 %v1523_v48  ;;  %v1451_v14 = vpop.f32.mrb[28].mxu0  ;;  %v917_v48 = vld [vmem:[%s2610_s5 + $0x78] sm:$0xff]  ;;  %v595_v58 = vmax.f32 %v541_v28, 0.0  ;;  %v914_v28 = vld [vmem:[%s2610_s5 + $0x60] sm:$0xff] }
 0x134   : > { %v2169_v57 = vadd.f32 %v1451_v14, %v2075_v24  ;;  %v550_v53 = vpop.f32.mrb[29].mxu0  ;;  %v1531_v13 = vpack.c.bf16 %v917_v48, %v915_v27  ;;  %v596_v14 = vmax.f32 %v546_v20, 0.0  ;;  %v918_v27 = vld [vmem:[%s2610_s5 + $0x80] sm:$0xff]  ;;  %v920_v48 = vld [vmem:[%s2610_s5 + $0x90] sm:$0xff] }
 0x135   : > { %788 = vmatmul.mubr.f32.gmra.mrb[58].mxu0 %v582_v7  ;;  %860 = vmatmul.mubr.f32.gmra.mrb[2].mxu1 %v594_v36  ;;  %v551_v63 = vadd.f32 %v2075_v24, %v550_v53  ;;  %v1535_v53 = vpack.c.bf16 %v921_v4, %v919_v23  ;;  %v1537_v10 = vpack.c.bf16 %v920_v48, %v918_v27  ;;  %v930_v48 = vld [vmem:[%s2610_s5 + $0xe0] sm:$0xff] }
 0x136   : > { %1526 = vmatpush1.bf16.msra.mxu1 %v1525_v31  ;;  %793 = vmatprep.mubr.f32.mxu0 %v1712_v15  ;;  %v916_v31 = vld [vmem:[%s2610_s5 + $0x70] sm:$0xff]  ;;  %v598_v23 = vmax.f32 %v2169_v57, 0.0 }
 0x137   : > { %865 = vmatprep.mubr.f32.mxu1 %v1712_v15  ;;  %1528 = vmatprep.subr.bf16.mxu1 %v1527_v40  ;;  %v1454_v7 = vpop.f32.mrb[30].mxu0  ;;  %v1533_v43 = vpack.c.bf16 %v916_v31, %v914_v28  ;;  %v927_v28 = vld [vmem:[%s2610_s5 + $0xc8] sm:$0xff] }
 0x138   : > { %v2196_v32 = vadd.f32 %v1454_v7, %v2075_v24  ;;  %v560_v36 = vpop.f32.mrb[31].mxu0  ;;  %v586_v7 = vmax.f32 %v2098_v35, 0.0  ;;  %v933_v35 = vld [vmem:[%s2610_s5 + $0xf8] sm:$0xff] }
 0x139   : > { %794 = vmatmul.mubr.f32.gmra.mrb[60].mxu0 %v583_v19  ;;  %866 = vmatmul.mubr.f32.gmra.mrb[4].mxu1 %v595_v58  ;;  %v561_v40 = vadd.f32 %v2075_v24, %v560_v36  ;;  %v923_v24 = vld [vmem:[%s2610_s5 + $0xa8] sm:$0xff]  ;;  %v925_v58 = vld [vmem:[%s2610_s5 + $0xb8] sm:$0xff]  ;;  %v585_v19 = vmax.f32 %v2101_v39, 0.0  ;;  %v926_v36 = vld [vmem:[%s2610_s5 + $0xc0] sm:$0xff] }
 0x13a   : > { %1530 = vmatpush1.bf16.msra.mxu1 %v1529_v6  ;;  %799 = vmatprep.mubr.f32.mxu0 %v1712_v15  ;;  %v597_v6 = vmax.f32 %v551_v63, 0.0  ;;  %v1539_v20 = vpack.c.bf16 %v925_v58, %v923_v24  ;;  %v924_v63 = vld [vmem:[%s2610_s5 + $0xb0] sm:$0xff]  ;;  %v929_v39 = vld [vmem:[%s2610_s5 + $0xd8] sm:$0xff]  ;;  %v600_v58 = vmax.f32 %v2196_v32, 0.0 }
 0x13b   : > { %871 = vmatprep.mubr.f32.mxu1 %v1712_v15  ;;  %1532 = vmatprep.subr.bf16.mxu1 %v1531_v13  ;;  %v922_v13 = vld [vmem:[%s2610_s5 + $0xa0] sm:$0xff]  ;;  %v1543_v4 = vpack.c.bf16 %v929_v39, %v927_v28  ;;  %v599_v57 = vmax.f32 %v561_v40, 0.0  ;;  %v932_v40 = vld [vmem:[%s2610_s5 + $0xf0] sm:$0xff] }
 0x13c   : > { %v1541_v31 = vpack.c.bf16 %v924_v63, %v922_v13  ;;  %v1549_v24 = vpack.c.bf16 %v932_v40, %v930_v48  ;;  %v633_v13 = vld [vmem:[%s2609_s4] sm:$0x3] }
 0x13d   : > { %800 = vmatmul.mubr.f32.gmra.mrb[62].mxu0 %v584_v44  ;;  %872 = vmatmul.mubr.f32.gmra.mrb[6].mxu1 %v596_v14  ;;  %v931_v44 = vld [vmem:[%s2610_s5 + $0xe8] sm:$0xff] }
 0x13e   : > { %1534 = vmatpush1.bf16.msra.mxu1 %v1533_v43  ;;  %805 = vmatprep.mubr.f32.mxu0 %v1712_v15  ;;  %v928_v43 = vld [vmem:[%s2610_s5 + $0xd0] sm:$0xff]  ;;  %v1547_v27 = vpack.c.bf16 %v933_v35, %v931_v44 }
 0x13f   : > { %877 = vmatprep.mubr.f32.mxu1 %v1712_v15  ;;  %1536 = vmatprep.subr.bf16.mxu1 %v1535_v53  ;;  %v1545_v14 = vpack.c.bf16 %v928_v43, %v926_v36  ;;  %v587_v53 = vmax.f32 %v2109_v51, 0.0  ;;  %v588_v51 = vmax.f32 %v2106_v47, 0.0  ;;  %v590_v47 = vmax.f32 %v2114_v61, 0.0 }
 0x140   : > { %v635_v61 = vlaneseq }
 0x141   : > { %806 = vmatmul.mubr.f32.gmra.mrb[64].mxu0 %v585_v19  ;;  %878 = vmatmul.mubr.f32.gmra.mrb[8].mxu1 %v597_v6  ;;  %v589_v6 = vmax.f32 %v2117_v3, 0.0  ;;  %v591_v3 = vmax.f32 %v2125_v9, 0.0 }
 0x142   : > { %1538 = vmatpush1.bf16.msra.mxu1 %v1537_v10  ;;  %811 = vmatprep.mubr.f32.mxu0 %v1712_v15  ;;  %v636_v32 = vshrl.u32 %v635_v61, 7 }
 0x143   : > { %883 = vmatprep.mubr.f32.mxu1 %v1712_v15  ;;  %1540 = vmatprep.subr.bf16.mxu1 %v1539_v20 }
 0x144   : > { %v637_v20 = vsub.s32 0, %v636_v32  ;;  %v641_v63 = vsub.s32 1, %v636_v32 }
 0x145   : > { %812 = vmatmul.mubr.f32.gmra.mrb[66].mxu0 %v586_v7  ;;  %884 = vmatmul.mubr.f32.gmra.mrb[10].mxu1 %v598_v23 }
 0x146   : > { %1542 = vmatpush1.bf16.msra.mxu1 %v1541_v31  ;;  %817 = vmatprep.mubr.f32.mxu0 %v1712_v15  ;;  %v2400_v31 = vrot.slane %v633_v13, %v637_v20  ;;  %v2402_v7 = vrot.slane %v633_v13, %v641_v63 }
 0x147   : > { %889 = vmatprep.mubr.f32.mxu1 %v1712_v15  ;;  %1544 = vmatprep.subr.bf16.mxu1 %v1543_v4 }
 0x149   : > { %818 = vmatmul.mubr.f32.gmra.mrb[68].mxu0 %v587_v53  ;;  %890 = vmatmul.mubr.f32.gmra.mrb[12].mxu1 %v599_v57 }
 0x14a   : > { %1546 = vmatpush1.bf16.msra.mxu1 %v1545_v14  ;;  %823 = vmatprep.mubr.f32.mxu0 %v1712_v15 }
 0x14b   : > { %895 = vmatprep.mubr.f32.mxu1 %v1712_v15  ;;  %1548 = vmatprep.subr.bf16.mxu1 %v1547_v27 }
 0x14d   : > { %824 = vmatmul.mubr.f32.gmra.mrb[70].mxu0 %v588_v51  ;;  %896 = vmatmul.mubr.f32.gmra.mrb[14].mxu1 %v600_v58 }
 0x14e   : > { %1550 = vmatpush1.bf16.msra.mxu1 %v1549_v24  ;;  %829 = vmatprep.mubr.f32.mxu0 %v1712_v15 }
 0x14f   : > { %998 = vmatprep.mubr.f32.mxu1 %v1712_v15 }
 0x151   : > { %830 = vmatmul.mubr.f32.gmra.mrb[72].mxu0 %v589_v6  ;;  %999 = vmatmul.mubr.f32.vlgmr.msra.gmra.mrb[16].mxu1 %v1803_v16  ;;  %v592_v16 = vmax.f32 %v2122_v11, 0.0 }
 0x152   : > { %835 = vmatprep.mubr.f32.mxu0 %v1712_v15  ;;  %1004 = vmatprep.mubr.f32.mxu1 %v1712_v15 }
 0x155   : > { %836 = vmatmul.mubr.f32.gmra.mrb[74].mxu0 %v590_v47  ;;  %1005 = vmatmul.mubr.f32.gmra.mrb[18].mxu1 %v1892_v52 }
 0x156   : > { %841 = vmatprep.mubr.f32.mxu0 %v1712_v15  ;;  %1010 = vmatprep.mubr.f32.mxu1 %v1712_v15 }
 0x159   : > { %842 = vmatmul.mubr.f32.gmra.mrb[76].mxu0 %v591_v3  ;;  %1011 = vmatmul.mubr.f32.gmra.mrb[20].mxu1 %v1901_v56 }
 0x15a   : > { %847 = vmatprep.mubr.f32.mxu0 %v1712_v15  ;;  %1016 = vmatprep.mubr.f32.mxu1 %v1712_v15 }
 0x15d   : > { %848 = vmatmul.mubr.f32.gmra.mrb[78].mxu0 %v592_v16  ;;  %1017 = vmatmul.mubr.f32.gmra.mrb[22].mxu1 %v1912_v62 }
 0x15e   : > { %1022 = vmatprep.mubr.f32.mxu1 %v1712_v15 }
 0x161   : > { %1023 = vmatmul.mubr.f32.gmra.mrb[24].mxu1 %v1921_v2 }
 0x162   : > { %1028 = vmatprep.mubr.f32.mxu1 %v1712_v15 }
 0x165   : > { %1029 = vmatmul.mubr.f32.gmra.mrb[26].mxu1 %v1933_v8 }
 0x166   : > { %1034 = vmatprep.mubr.f32.mxu1 %v1712_v15 }
 0x169   : > { %1035 = vmatmul.mubr.f32.gmra.mrb[28].mxu1 %v1943_v12 }
 0x16a   : > { %1040 = vmatprep.mubr.f32.mxu1 %v1712_v15 }
 0x16d   : > { %1041 = vmatmul.mubr.f32.gmra.mrb[30].mxu1 %v1949_v17 }
 0x16e   : > { %1046 = vmatprep.mubr.f32.mxu1 %v1712_v15 }
 0x171   : > { %1047 = vmatmul.mubr.f32.gmra.mrb[32].mxu1 %v1953_v18 }
 0x172   : > { %1052 = vmatprep.mubr.f32.mxu1 %v1712_v15 }
 0x175   : > { %1053 = vmatmul.mubr.f32.gmra.mrb[34].mxu1 %v1959_v21 }
 0x176   : > { %1058 = vmatprep.mubr.f32.mxu1 %v1712_v15 }
 0x179   : > { %1059 = vmatmul.mubr.f32.gmra.mrb[36].mxu1 %v1963_v22 }
 0x17a   : > { %1064 = vmatprep.mubr.f32.mxu1 %v1712_v15 }
 0x17d   : > { %1065 = vmatmul.mubr.f32.gmra.mrb[38].mxu1 %v1969_v25 }
 0x17e   : > { %1070 = vmatprep.mubr.f32.mxu1 %v1712_v15 }
 0x181   : > { %1071 = vmatmul.mubr.f32.gmra.mrb[40].mxu1 %v1972_v26 }
 0x182   : > { %1076 = vmatprep.mubr.f32.mxu1 %v1712_v15 }
 0x185   : > { %1077 = vmatmul.mubr.f32.gmra.mrb[42].mxu1 %v1977_v29 }
 0x186   : > { %1082 = vmatprep.mubr.f32.mxu1 %v1712_v15 }
 0x189   : > { %1083 = vmatmul.mubr.f32.gmra.mrb[44].mxu1 %v1980_v30 }
 0x18a   : > { %1088 = vmatprep.mubr.f32.mxu1 %v1712_v15 }
 0x18d   : > { %1089 = vmatmul.mubr.f32.gmra.mrb[46].mxu1 %v1985_v33 }
 0x18e   : > { %1094 = vmatprep.mubr.f32.mxu1 %v1712_v15 }
 0x191   : > { %1095 = vmatmul.mubr.f32.gmra.mrb[48].mxu1 %v1988_v34 }
 0x192   : > { %1100 = vmatprep.mubr.f32.mxu1 %v1712_v15 }
 0x195   : > { %1101 = vmatmul.mubr.f32.gmra.mrb[50].mxu1 %v1993_v37 }
 0x196   : > { %1106 = vmatprep.mubr.f32.mxu1 %v1712_v15 }
 0x199   : > { %1107 = vmatmul.mubr.f32.gmra.mrb[52].mxu1 %v1996_v38 }
 0x19a   : > { %1112 = vmatprep.mubr.f32.mxu1 %v1712_v15 }
 0x19d   : > { %1113 = vmatmul.mubr.f32.gmra.mrb[54].mxu1 %v2001_v41 }
 0x19e   : > { %1118 = vmatprep.mubr.f32.mxu1 %v1712_v15 }
 0x1a1   : > { %1119 = vmatmul.mubr.f32.gmra.mrb[56].mxu1 %v2004_v42 }
 0x1a2   : > { %1124 = vmatprep.mubr.f32.mxu1 %v1712_v15 }
 0x1a5   : > { %1125 = vmatmul.mubr.f32.gmra.mrb[58].mxu1 %v2009_v45 }
 0x1a6   : > { %1130 = vmatprep.mubr.f32.mxu1 %v1712_v15 }
 0x1a9   : > { %1131 = vmatmul.mubr.f32.gmra.mrb[60].mxu1 %v2012_v46 }
 0x1aa   : > { %1136 = vmatprep.mubr.f32.mxu1 %v1712_v15 }
 0x1ad   : > { %1137 = vmatmul.mubr.f32.gmra.mrb[62].mxu1 %v2017_v49 }
 0x1ae   : > { %1142 = vmatprep.mubr.f32.mxu1 %v1712_v15 }
 0x1b1   : > { %1143 = vmatmul.mubr.f32.gmra.mrb[0].mxu1 %v2020_v50 }
 0x1b2   : > { %1148 = vmatprep.mubr.f32.mxu1 %v1712_v15 }
 0x1b5   : > { %1149 = vmatmul.mubr.f32.gmra.mrb[2].mxu1 %v2025_v54 }
 0x1b6   : > { %1154 = vmatprep.mubr.f32.mxu1 %v1712_v15 }
 0x1b9   : > { %1155 = vmatmul.mubr.f32.gmra.mrb[4].mxu1 %v2028_v55 }
 0x1ba   : > { %1160 = vmatprep.mubr.f32.mxu1 %v1712_v15 }
 0x1bd   : > { %1161 = vmatmul.mubr.f32.gmra.mrb[6].mxu1 %v2033_v59 }
 0x1be   : > { %1166 = vmatprep.mubr.f32.mxu1 %v1712_v15 }
 0x1c1   : > { %1167 = vmatmul.mubr.f32.gmra.mrb[8].mxu1 %v2036_v60 }
 0x1c2   : > { %1172 = vmatprep.mubr.f32.mxu1 %v1712_v15 }
 0x1c5   : > { %1173 = vmatmul.mubr.f32.gmra.mrb[10].mxu1 %v2041_v0 }
 0x1c6   : > { %1178 = vmatprep.mubr.f32.mxu1 %v1712_v15 }
 0x1c9   : > { %1179 = vmatmul.mubr.f32.gmra.mrb[12].mxu1 %v2044_v1 }
 0x1ca   : > { %1184 = vmatprep.mubr.f32.mxu1 %v1712_v15 }
 0x1cd   : > { %1185 = vmatmul.mubr.f32.gmra.mrb[14].mxu1 %v2049_v5 }
 0x1d4   : > { %v711_v52 = vpop.f32.mrb[32].mxu0 }
 0x1d5   : > { %v713_v56 = vpop.f32.mrb[33].mxu0  ;;  %v712_v36 = vadd.f32 %v711_v52, %v2400_v31 }
 0x1d6   : > { %v714_v43 = vadd.f32 %v713_v56, %v2402_v7 }
 0x1d8   : > { %v717_v62 = vpop.f32.mrb[34].mxu0 }
 0x1d9   : > { %v719_v2 = vpop.f32.mrb[35].mxu0  ;;  %v718_v48 = vadd.f32 %v717_v62, %v2400_v31 }
 0x1da   : > { %v720_v40 = vadd.f32 %v719_v2, %v2402_v7 }
 0x1dc   : > { %v2329_v8 = vpop.f32.mrb[36].mxu0 }
 0x1dd   : > { %v2331_v12 = vpop.f32.mrb[37].mxu0  ;;  %v724_v16 = vadd.f32 %v2329_v8, %v2400_v31 }
 0x1de   : > { %v726_v52 = vadd.f32 %v2331_v12, %v2402_v7 }
 0x1e0   : > { %v2333_v17 = vpop.f32.mrb[38].mxu0 }
 0x1e1   : > { %v2335_v18 = vpop.f32.mrb[39].mxu0  ;;  %v730_v13 = vadd.f32 %v2333_v17, %v2400_v31 }
 0x1e2   : > { %v732_v8 = vadd.f32 %v2335_v18, %v2402_v7 }
 0x1e4   : > { %v2337_v21 = vpop.f32.mrb[40].mxu0 }
 0x1e5   : > { %v2339_v22 = vpop.f32.mrb[41].mxu0 }
 0x1e6   : > { %v738_v17 = vadd.f32 %v2339_v22, %v2402_v7 }
 0x1e8   : > { %v2341_v25 = vpop.f32.mrb[42].mxu0 }
 0x1e9   : > { %v2343_v26 = vpop.f32.mrb[43].mxu0 }
 0x1ec   : > { %v2345_v29 = vpop.f32.mrb[44].mxu0 }
 0x1ed   : > { %v2347_v30 = vpop.f32.mrb[45].mxu0 }
 0x1f0   : > { %v2349_v33 = vpop.f32.mrb[46].mxu0 }
 0x1f1   : > { %v2351_v34 = vpop.f32.mrb[47].mxu0 }
 0x1f4   : > { %v2353_v37 = vpop.f32.mrb[48].mxu0 }
 0x1f5   : > { %v2355_v38 = vpop.f32.mrb[49].mxu0 }
 0x1f8   : > { %v2357_v41 = vpop.f32.mrb[50].mxu0 }
 0x1f9   : > { %v2359_v42 = vpop.f32.mrb[51].mxu0 }
 0x1fc   : > { %v2361_v45 = vpop.f32.mrb[52].mxu0 }
 0x1fd   : > { %v2363_v46 = vpop.f32.mrb[53].mxu0 }
 0x200   : > { %v2365_v49 = vpop.f32.mrb[54].mxu0 }
 0x201   : > { %v2367_v50 = vpop.f32.mrb[55].mxu0 }
 0x204   : > { %v2369_v54 = vpop.f32.mrb[56].mxu0 }
 0x205   : > { %v2371_v55 = vpop.f32.mrb[57].mxu0 }
 0x208   : > { %v2373_v59 = vpop.f32.mrb[58].mxu0 }
 0x209   : > { %v2375_v60 = vpop.f32.mrb[59].mxu0 }
 0x20c   : > { %v2377_v0 = vpop.f32.mrb[60].mxu0 }
 0x20d   : > { %v2379_v1 = vpop.f32.mrb[61].mxu0 }
 0x210   : > { %v2381_v5 = vpop.f32.mrb[62].mxu0 }
 0x211   : > { %v2383_v15 = vpop.f32.mrb[63].mxu0 }
 0x214   : > { %v2385_v11 = vpop.f32.mrb[64].mxu0 }
 0x215   : > { %v2387_v9 = vpop.f32.mrb[65].mxu0 }
 0x218   : > { %v2389_v10 = vpop.f32.mrb[66].mxu0 }
 0x219   : > { %v2391_v19 = vpop.f32.mrb[67].mxu0 }
 0x21c   : > { %v2396_v28 = vpop.f32.mrb[68].mxu0 }
 0x21d   : > { %v2398_v39 = vpop.f32.mrb[69].mxu0 }
 0x220   : > { %v2404_v23 = vpop.f32.mrb[70].mxu0 }
 0x221   : > { %v2406_v4 = vpop.f32.mrb[71].mxu0 }
 0x224   : > { %v2411_v44 = vpop.f32.mrb[72].mxu0  ;;  %v1000_v35 = vpop.f32.mrb[16].mxu1 }
 0x225   : > { %v1001_v57 = vadd.f32 %v1000_v35, %v712_v36  ;;  %v2418_v14 = vpop.f32.mrb[73].mxu0  ;;  %v1002_v53 = vpop.f32.mrb[17].mxu1 }
 0x226   : > { %v1003_v27 = vadd.f32 %v1002_v53, %v714_v43  ;;  %v736_v53 = vadd.f32 %v2337_v21, %v2400_v31 }
 0x227   : > { %1191 = vst [vmem:[%s2416_s19] sm:$0xff] %v1001_v57 }
 0x228   : > { %1192 = vst [vmem:[%s2416_s19 + $0x8] sm:$0xff] %v1003_v27  ;;  %v2424_v24 = vpop.f32.mrb[74].mxu0  ;;  %v1006_v51 = vpop.f32.mrb[18].mxu1 }
 0x229   : > { %v1007_v58 = vadd.f32 %v1006_v51, %v718_v48  ;;  %v2426_v6 = vpop.f32.mrb[75].mxu0  ;;  %v1008_v47 = vpop.f32.mrb[19].mxu1  ;;  %v742_v51 = vadd.f32 %v2341_v25, %v2400_v31 }
 0x22a   : > { %v1009_v3 = vadd.f32 %v1008_v47, %v720_v40 }
 0x22b   : > { %1193 = vst [vmem:[%s2416_s19 + $0x10] sm:$0xff] %v1007_v58  ;;  %v744_v58 = vadd.f32 %v2343_v26, %v2402_v7 }
 0x22c   : > { %1194 = vst [vmem:[%s2416_s19 + $0x18] sm:$0xff] %v1009_v3  ;;  %v2434_v56 = vpop.f32.mrb[76].mxu0  ;;  %v1012_v62 = vpop.f32.mrb[20].mxu1 }
 0x22d   : > { %v1013_v2 = vadd.f32 %v1012_v62, %v724_v16  ;;  %v2436_v61 = vpop.f32.mrb[77].mxu0  ;;  %v1014_v32 = vpop.f32.mrb[21].mxu1  ;;  %v748_v16 = vadd.f32 %v2345_v29, %v2400_v31 }
 0x22e   : > { %v1015_v20 = vadd.f32 %v1014_v32, %v726_v52  ;;  %v750_v52 = vadd.f32 %v2347_v30, %v2402_v7  ;;  %v754_v32 = vadd.f32 %v2349_v33, %v2400_v31 }
 0x22f   : > { %1195 = vst [vmem:[%s2416_s19 + $0x20] sm:$0xff] %v1013_v2 }
 0x230   : > { %1196 = vst [vmem:[%s2416_s19 + $0x28] sm:$0xff] %v1015_v20  ;;  %v2444_v12 = vpop.f32.mrb[78].mxu0  ;;  %v1018_v63 = vpop.f32.mrb[22].mxu1  ;;  %v756_v20 = vadd.f32 %v2351_v34, %v2402_v7 }
 0x231   : > { %v1019_v36 = vadd.f32 %v1018_v63, %v730_v13  ;;  %v2446_v43 = vpop.f32.mrb[79].mxu0  ;;  %v1020_v35 = vpop.f32.mrb[23].mxu1  ;;  %v760_v63 = vadd.f32 %v2353_v37, %v2400_v31 }
 0x232   : > { %v1021_v57 = vadd.f32 %v1020_v35, %v732_v8 }
 0x233   : > { %1197 = vst [vmem:[%s2416_s19 + $0x30] sm:$0xff] %v1019_v36  ;;  %v762_v36 = vadd.f32 %v2355_v38, %v2402_v7 }
 0x234   : > { %1198 = vst [vmem:[%s2416_s19 + $0x38] sm:$0xff] %v1021_v57  ;;  %v1024_v18 = vpop.f32.mrb[24].mxu1 }
 0x235   : > { %v1025_v27 = vadd.f32 %v1024_v18, %v736_v53  ;;  %v1026_v48 = vpop.f32.mrb[25].mxu1  ;;  %v766_v53 = vadd.f32 %v2357_v41, %v2400_v31 }
 0x236   : > { %v1027_v40 = vadd.f32 %v1026_v48, %v738_v17  ;;  %v768_v17 = vadd.f32 %v2359_v42, %v2402_v7  ;;  %v772_v48 = vadd.f32 %v2361_v45, %v2400_v31 }
 0x237   : > { %1199 = vst [vmem:[%s2416_s19 + $0x40] sm:$0xff] %v1025_v27 }
 0x238   : > { %1200 = vst [vmem:[%s2416_s19 + $0x48] sm:$0xff] %v1027_v40  ;;  %v1030_v21 = vpop.f32.mrb[26].mxu1  ;;  %v774_v40 = vadd.f32 %v2363_v46, %v2402_v7 }
 0x239   : > { %v1031_v47 = vadd.f32 %v1030_v21, %v742_v51  ;;  %v1032_v3 = vpop.f32.mrb[27].mxu1  ;;  %v778_v21 = vadd.f32 %v2365_v49, %v2400_v31 }
 0x23a   : > { %v1033_v22 = vadd.f32 %v1032_v3, %v744_v58 }
 0x23b   : > { %1201 = vst [vmem:[%s2416_s19 + $0x50] sm:$0xff] %v1031_v47  ;;  %v780_v47 = vadd.f32 %v2367_v50, %v2402_v7 }
 0x23c   : > { %1202 = vst [vmem:[%s2416_s19 + $0x58] sm:$0xff] %v1033_v22  ;;  %v1036_v25 = vpop.f32.mrb[28].mxu1 }
 0x23d   : > { %v1037_v62 = vadd.f32 %v1036_v25, %v748_v16  ;;  %v1038_v2 = vpop.f32.mrb[29].mxu1  ;;  %v784_v16 = vadd.f32 %v2369_v54, %v2400_v31 }
 0x23e   : > { %v1039_v26 = vadd.f32 %v1038_v2, %v750_v52  ;;  %v786_v52 = vadd.f32 %v2371_v55, %v2402_v7  ;;  %v790_v2 = vadd.f32 %v2373_v59, %v2400_v31 }
 0x23f   : > { %1203 = vst [vmem:[%s2416_s19 + $0x60] sm:$0xff] %v1037_v62 }
 0x240   : > { %1204 = vst [vmem:[%s2416_s19 + $0x68] sm:$0xff] %v1039_v26  ;;  %v1042_v29 = vpop.f32.mrb[30].mxu1  ;;  %v792_v26 = vadd.f32 %v2375_v60, %v2402_v7 }
 0x241   : > { %v1043_v13 = vadd.f32 %v1042_v29, %v754_v32  ;;  %v1044_v8 = vpop.f32.mrb[31].mxu1  ;;  %v796_v29 = vadd.f32 %v2377_v0, %v2400_v31 }
 0x242   : > { %v1045_v30 = vadd.f32 %v1044_v8, %v756_v20 }
 0x243   : > { %1205 = vst [vmem:[%s2416_s19 + $0x70] sm:$0xff] %v1043_v13  ;;  %v798_v13 = vadd.f32 %v2379_v1, %v2402_v7 }
 0x244   : > { %1206 = vst [vmem:[%s2416_s19 + $0x78] sm:$0xff] %v1045_v30  ;;  %v1048_v33 = vpop.f32.mrb[32].mxu1 }
 0x245   : > { %v1049_v35 = vadd.f32 %v1048_v33, %v760_v63  ;;  %v1050_v57 = vpop.f32.mrb[33].mxu1  ;;  %v802_v63 = vadd.f32 %v2381_v5, %v2400_v31 }
 0x246   : > { %v1051_v34 = vadd.f32 %v1050_v57, %v762_v36  ;;  %v804_v36 = vadd.f32 %v2383_v15, %v2402_v7  ;;  %v808_v57 = vadd.f32 %v2385_v11, %v2400_v31 }
 0x247   : > { %1207 = vst [vmem:[%s2416_s19 + $0x80] sm:$0xff] %v1049_v35 }
 0x248   : > { %1208 = vst [vmem:[%s2416_s19 + $0x88] sm:$0xff] %v1051_v34  ;;  %v1054_v37 = vpop.f32.mrb[34].mxu1  ;;  %v810_v34 = vadd.f32 %v2387_v9, %v2402_v7 }
 0x249   : > { %v1055_v18 = vadd.f32 %v1054_v37, %v766_v53  ;;  %v1056_v27 = vpop.f32.mrb[35].mxu1  ;;  %v814_v37 = vadd.f32 %v2389_v10, %v2400_v31 }
 0x24a   : > { %v1057_v38 = vadd.f32 %v1056_v27, %v768_v17 }
 0x24b   : > { %1209 = vst [vmem:[%s2416_s19 + $0x90] sm:$0xff] %v1055_v18  ;;  %v816_v18 = vadd.f32 %v2391_v19, %v2402_v7 }
 0x24c   : > { %1210 = vst [vmem:[%s2416_s19 + $0x98] sm:$0xff] %v1057_v38  ;;  %v1060_v41 = vpop.f32.mrb[36].mxu1 }
 0x24d   : > { %v1061_v51 = vadd.f32 %v1060_v41, %v772_v48  ;;  %v1062_v58 = vpop.f32.mrb[37].mxu1  ;;  %v820_v48 = vadd.f32 %v2396_v28, %v2400_v31 }
 0x24e   : > { %v1063_v42 = vadd.f32 %v1062_v58, %v774_v40  ;;  %v822_v40 = vadd.f32 %v2398_v39, %v2402_v7  ;;  %v826_v58 = vadd.f32 %v2404_v23, %v2400_v31 }
 0x24f   : > { %1211 = vst [vmem:[%s2416_s19 + $0xa0] sm:$0xff] %v1061_v51 }
 0x250   : > { %1212 = vst [vmem:[%s2416_s19 + $0xa8] sm:$0xff] %v1063_v42  ;;  %v1066_v45 = vpop.f32.mrb[38].mxu1  ;;  %v828_v42 = vadd.f32 %v2406_v4, %v2402_v7 }
 0x251   : > { %v1067_v3 = vadd.f32 %v1066_v45, %v778_v21  ;;  %v1068_v22 = vpop.f32.mrb[39].mxu1  ;;  %v832_v45 = vadd.f32 %v2411_v44, %v2400_v31 }
 0x252   : > { %v1069_v46 = vadd.f32 %v1068_v22, %v780_v47 }
 0x253   : > { %1213 = vst [vmem:[%s2416_s19 + $0xb0] sm:$0xff] %v1067_v3  ;;  %v834_v3 = vadd.f32 %v2418_v14, %v2402_v7 }
 0x254   : > { %1214 = vst [vmem:[%s2416_s19 + $0xb8] sm:$0xff] %v1069_v46  ;;  %v1072_v49 = vpop.f32.mrb[40].mxu1 }
 0x255   : > { %v1073_v25 = vadd.f32 %v1072_v49, %v784_v16  ;;  %v1074_v62 = vpop.f32.mrb[41].mxu1  ;;  %v838_v16 = vadd.f32 %v2424_v24, %v2400_v31  ;;  %v846_v24 = vadd.f32 %v2436_v61, %v2402_v7 }
 0x256   : > { %v1075_v50 = vadd.f32 %v1074_v62, %v786_v52  ;;  %v840_v52 = vadd.f32 %v2426_v6, %v2402_v7  ;;  %v844_v62 = vadd.f32 %v2434_v56, %v2400_v31  ;;  %v852_v56 = vadd.f32 %v2446_v43, %v2402_v7 }
 0x257   : > { %1215 = vst [vmem:[%s2416_s19 + $0xc0] sm:$0xff] %v1073_v25 }
 0x258   : > { %1216 = vst [vmem:[%s2416_s19 + $0xc8] sm:$0xff] %v1075_v50  ;;  %v1078_v54 = vpop.f32.mrb[42].mxu1 }
 0x259   : > { %v1079_v32 = vadd.f32 %v1078_v54, %v790_v2  ;;  %v1080_v20 = vpop.f32.mrb[43].mxu1  ;;  %v850_v54 = vadd.f32 %v2444_v12, %v2400_v31 }
 0x25a   : > { %v1081_v55 = vadd.f32 %v1080_v20, %v792_v26 }
 0x25b   : > { %1217 = vst [vmem:[%s2416_s19 + $0xd0] sm:$0xff] %v1079_v32 }
 0x25c   : > { %1218 = vst [vmem:[%s2416_s19 + $0xd8] sm:$0xff] %v1081_v55  ;;  %v1084_v59 = vpop.f32.mrb[44].mxu1 }
 0x25d   : > { %v1085_v8 = vadd.f32 %v1084_v59, %v796_v29  ;;  %v1086_v30 = vpop.f32.mrb[45].mxu1 }
 0x25e   : > { %v1087_v60 = vadd.f32 %v1086_v30, %v798_v13 }
 0x25f   : > { %1219 = vst [vmem:[%s2416_s19 + $0xe0] sm:$0xff] %v1085_v8 }
 0x260   : > { %1220 = vst [vmem:[%s2416_s19 + $0xe8] sm:$0xff] %v1087_v60  ;;  %v1090_v0 = vpop.f32.mrb[46].mxu1 }
 0x261   : > { %v1091_v33 = vadd.f32 %v1090_v0, %v802_v63  ;;  %v1092_v35 = vpop.f32.mrb[47].mxu1 }
 0x262   : > { %v1093_v1 = vadd.f32 %v1092_v35, %v804_v36 }
 0x263   : > { %1221 = vst [vmem:[%s2416_s19 + $0xf0] sm:$0xff] %v1091_v33 }
 0x264   : > { %1222 = vst [vmem:[%s2416_s19 + $0xf8] sm:$0xff] %v1093_v1  ;;  %v1096_v5 = vpop.f32.mrb[48].mxu1 }
 0x265   : > { %v1097_v53 = vadd.f32 %v1096_v5, %v808_v57  ;;  %v1098_v17 = vpop.f32.mrb[49].mxu1 }
 0x266   : > { %v1099_v15 = vadd.f32 %v1098_v17, %v810_v34 }
 0x267   : > { %1223 = vst [vmem:[%s2416_s19 + $0x100] sm:$0xff] %v1097_v53 }
 0x268   : > { %1224 = vst [vmem:[%s2416_s19 + $0x108] sm:$0xff] %v1099_v15  ;;  %v1102_v11 = vpop.f32.mrb[50].mxu1 }
 0x269   : > { %v1103_v27 = vadd.f32 %v1102_v11, %v814_v37  ;;  %v1104_v38 = vpop.f32.mrb[51].mxu1 }
 0x26a   : > { %v1105_v9 = vadd.f32 %v1104_v38, %v816_v18 }
 0x26b   : > { %1225 = vst [vmem:[%s2416_s19 + $0x110] sm:$0xff] %v1103_v27 }
 0x26c   : > { %1226 = vst [vmem:[%s2416_s19 + $0x118] sm:$0xff] %v1105_v9  ;;  %v1108_v10 = vpop.f32.mrb[52].mxu1 }
 0x26d   : > { %v1109_v41 = vadd.f32 %v1108_v10, %v820_v48  ;;  %v1110_v51 = vpop.f32.mrb[53].mxu1 }
 0x26e   : > { %v1111_v19 = vadd.f32 %v1110_v51, %v822_v40 }
 0x26f   : > { %1227 = vst [vmem:[%s2416_s19 + $0x120] sm:$0xff] %v1109_v41 }
 0x270   : > { %1228 = vst [vmem:[%s2416_s19 + $0x128] sm:$0xff] %v1111_v19  ;;  %v1114_v28 = vpop.f32.mrb[54].mxu1 }
 0x271   : > { %v1115_v21 = vadd.f32 %v1114_v28, %v826_v58  ;;  %v1116_v47 = vpop.f32.mrb[55].mxu1 }
 0x272   : > { %v1117_v39 = vadd.f32 %v1116_v47, %v828_v42 }
 0x273   : > { %1229 = vst [vmem:[%s2416_s19 + $0x130] sm:$0xff] %v1115_v21 }
 0x274   : > { %1230 = vst [vmem:[%s2416_s19 + $0x138] sm:$0xff] %v1117_v39  ;;  %v1120_v23 = vpop.f32.mrb[56].mxu1 }
 0x275   : > { %v1121_v22 = vadd.f32 %v1120_v23, %v832_v45  ;;  %v1122_v46 = vpop.f32.mrb[57].mxu1 }
 0x276   : > { %v1123_v4 = vadd.f32 %v1122_v46, %v834_v3 }
 0x277   : > { %1231 = vst [vmem:[%s2416_s19 + $0x140] sm:$0xff] %v1121_v22 }
 0x278   : > { %1232 = vst [vmem:[%s2416_s19 + $0x148] sm:$0xff] %v1123_v4  ;;  %v1126_v44 = vpop.f32.mrb[58].mxu1 }
 0x279   : > { %v1127_v49 = vadd.f32 %v1126_v44, %v838_v16  ;;  %v1128_v25 = vpop.f32.mrb[59].mxu1 }
 0x27a   : > { %v1129_v14 = vadd.f32 %v1128_v25, %v840_v52 }
 0x27b   : > { %1233 = vst [vmem:[%s2416_s19 + $0x150] sm:$0xff] %v1127_v49 }
 0x27c   : > { %1234 = vst [vmem:[%s2416_s19 + $0x158] sm:$0xff] %v1129_v14  ;;  %v1132_v50 = vpop.f32.mrb[60].mxu1 }
 0x27d   : > { %v1133_v2 = vadd.f32 %v1132_v50, %v844_v62  ;;  %v1134_v26 = vpop.f32.mrb[61].mxu1 }
 0x27e   : > { %v1135_v6 = vadd.f32 %v1134_v26, %v846_v24 }
 0x27f   : > { %1235 = vst [vmem:[%s2416_s19 + $0x160] sm:$0xff] %v1133_v2 }
 0x280   : > { %1236 = vst [vmem:[%s2416_s19 + $0x168] sm:$0xff] %v1135_v6  ;;  %v1138_v32 = vpop.f32.mrb[62].mxu1 }
 0x281   : > { %v1139_v20 = vadd.f32 %v1138_v32, %v850_v54  ;;  %v1140_v61 = vpop.f32.mrb[63].mxu1 }
 0x282   : > { %v1141_v55 = vadd.f32 %v1140_v61, %v852_v56 }
 0x283   : > { %1237 = vst [vmem:[%s2416_s19 + $0x170] sm:$0xff] %v1139_v20 }
 0x284   : > { %1238 = vst [vmem:[%s2416_s19 + $0x178] sm:$0xff] %v1141_v55  ;;  %v1144_v29 = vpop.f32.mrb[0].mxu1 }
 0x285   : > { %v1663_v13 = vadd.f32 %v1144_v29, %v2400_v31  ;;  %v1146_v59 = vpop.f32.mrb[1].mxu1 }
 0x286   : > { %v1664_v12 = vadd.f32 %v1146_v59, %v2402_v7 }
 0x287   : > { %1239 = vst [vmem:[%s2416_s19 + $0x180] sm:$0xff] %v1663_v13 }
 0x288   : > { %1240 = vst [vmem:[%s2416_s19 + $0x188] sm:$0xff] %v1664_v12  ;;  %v1150_v43 = vpop.f32.mrb[2].mxu1 }
 0x289   : > { %v1665_v8 = vadd.f32 %v1150_v43, %v2400_v31  ;;  %v1152_v30 = vpop.f32.mrb[3].mxu1 }
 0x28a   : > { %v1666_v60 = vadd.f32 %v1152_v30, %v2402_v7 }
 0x28b   : > { %1241 = vst [vmem:[%s2416_s19 + $0x190] sm:$0xff] %v1665_v8 }
 0x28c   : > { %1242 = vst [vmem:[%s2416_s19 + $0x198] sm:$0xff] %v1666_v60  ;;  %v1156_v63 = vpop.f32.mrb[4].mxu1 }
 0x28d   : > { %v1667_v36 = vadd.f32 %v1156_v63, %v2400_v31  ;;  %v1158_v0 = vpop.f32.mrb[5].mxu1 }
 0x28e   : > { %v1668_v33 = vadd.f32 %v1158_v0, %v2402_v7 }
 0x28f   : > { %1243 = vst [vmem:[%s2416_s19 + $0x1a0] sm:$0xff] %v1667_v36 }
 0x290   : > { %1244 = vst [vmem:[%s2416_s19 + $0x1a8] sm:$0xff] %v1668_v33  ;;  %v1162_v35 = vpop.f32.mrb[6].mxu1 }
 0x291   : > { %v1669_v1 = vadd.f32 %v1162_v35, %v2400_v31  ;;  %v1164_v57 = vpop.f32.mrb[7].mxu1 }
 0x292   : > { %v1670_v34 = vadd.f32 %v1164_v57, %v2402_v7 }
 0x293   : > { %1245 = vst [vmem:[%s2416_s19 + $0x1b0] sm:$0xff] %v1669_v1 }
 0x294   : > { %1246 = vst [vmem:[%s2416_s19 + $0x1b8] sm:$0xff] %v1670_v34  ;;  %v1168_v5 = vpop.f32.mrb[8].mxu1 }
 0x295   : > { %v1671_v53 = vadd.f32 %v1168_v5, %v2400_v31  ;;  %v1170_v17 = vpop.f32.mrb[9].mxu1 }
 0x296   : > { %v1672_v15 = vadd.f32 %v1170_v17, %v2402_v7 }
 0x297   : > { %1247 = vst [vmem:[%s2416_s19 + $0x1c0] sm:$0xff] %v1671_v53 }
 0x298   : > { %1248 = vst [vmem:[%s2416_s19 + $0x1c8] sm:$0xff] %v1672_v15  ;;  %v1174_v37 = vpop.f32.mrb[10].mxu1 }
 0x299   : > { %v1673_v18 = vadd.f32 %v1174_v37, %v2400_v31  ;;  %v1176_v11 = vpop.f32.mrb[11].mxu1 }
 0x29a   : > { %v1674_v27 = vadd.f32 %v1176_v11, %v2402_v7 }
 0x29b   : > { %1249 = vst [vmem:[%s2416_s19 + $0x1d0] sm:$0xff] %v1673_v18 }
 0x29c   : > { %1250 = vst [vmem:[%s2416_s19 + $0x1d8] sm:$0xff] %v1674_v27  ;;  %v1180_v38 = vpop.f32.mrb[12].mxu1 }
 0x29d   : > { %v1675_v9 = vadd.f32 %v1180_v38, %v2400_v31  ;;  %v1182_v48 = vpop.f32.mrb[13].mxu1 }
 0x29e   : > { %v1676_v40 = vadd.f32 %v1182_v48, %v2402_v7 }
 0x29f   : > { %1251 = vst [vmem:[%s2416_s19 + $0x1e0] sm:$0xff] %v1675_v9 }
 0x2a0   : > { %1252 = vst [vmem:[%s2416_s19 + $0x1e8] sm:$0xff] %v1676_v40  ;;  %v1186_v10 = vpop.f32.mrb[14].mxu1 }
 0x2a1   : > { %v1677_v41 = vadd.f32 %v1186_v10, %v2400_v31  ;;  %v1188_v51 = vpop.f32.mrb[15].mxu1 }
 0x2a2   : > { %v1678_v19 = vadd.f32 %v1188_v51, %v2402_v7 }
 0x2a3   : > { %1253 = vst [vmem:[%s2416_s19 + $0x1f0] sm:$0xff] %v1677_v41 }
 0x2a4   : > { %1254 = vst [vmem:[%s2416_s19 + $0x1f8] sm:$0xff] %v1678_v19 }
 0x2a5 PF: > { %s16_s21 = sadd.s32 1, %s1710_s21  }
 0x2a6   : > { %p13_p4 = scmp.ge.s32.totalorder %s16_s21, 4  }
 0x2a8   :  { %15 = sbr.rel (!%p13_p4) target bundleno = 1 (0x1), region = 74 }

</bundles_post_ra>
